<compile_context>
chip_gen: v6e
topology: v6e:2x2x1
jax: 0.10.0
libtpu: 0.0.40
codegen_flags: <defaults>
</compile_context>

<pallas_src>
import functools

import jax
import jax.numpy as jnp
from jax.experimental import pallas as pl
from jax.experimental.pallas import tpu as pltpu

EPS = 1e-8


def _device_kind():
    try:
        return jax.devices()[0].device_kind.lower()
    except Exception:
        return ""


def _round_up(v, m):
    return ((v + m - 1) // m) * m


def _gen_vmem_budget_bytes(kind):
    """Per-generation VMEM budget for (2 inputs x 2 buffers + f32 temporaries)."""
    if "v7" in kind or "7x" in kind:
        return 36 << 20   # 3.2 TB/s HBM -> bigger tiles to amortize step cost
    if "v6" in kind:
        return 24 << 20   # default scoped limit is 32 MiB
    return 12 << 20       # v5e (16 MiB default scoped limit) / unknown: stay safe


def _pick_tile_rows(n_rows, n_cols, itemsize, budget_bytes):
    """Rows per block so that 2 inputs x 2 pipeline buffers (input dtype) plus
    ~6 tile-sized f32 intermediates, all lane-padded, fit the VMEM budget."""
    d_pad = max(_round_up(n_cols, 128), 128)          # lane-padded VMEM width
    per_row = d_pad * (4 * itemsize + 6 * 4)           # 4 input bufs + 6 f32 temps
    rows = max(8, budget_bytes // per_row)
    rows -= rows % 8
    rows = max(rows, 8)
    if rows >= n_rows:
        return n_rows                                  # single full block (legal)
    return rows


def _kld_kernel(x_ref, y_ref, o_ref, *, n_rows, tile_rows, bf16_eup):
    x_in = x_ref[...]

    # Numerically stable log_softmax over the class (lane) axis.  The module's
    # "x + eps" is dropped: log_softmax is shift-invariant.
    if bf16_eup:
        # bf16 EUP exp (v6e/v7x only); accumulate lse in f32.
        m = jnp.max(x_in, axis=-1, keepdims=True)
        e = jnp.exp(x_in - m).astype(jnp.float32)
        m32 = m.astype(jnp.float32)
    else:
        xf = x_in.astype(jnp.float32)
        m32 = jnp.max(xf, axis=-1, keepdims=True)
        e = jnp.exp(xf - m32)
    lse = jnp.log(jnp.sum(e, axis=-1, keepdims=True)) + m32
    log_p = x_in.astype(jnp.float32) - lse

    t = y_ref[...].astype(jnp.float32) + EPS            # the module's "y + eps"
    # PyTorch KLDivLoss zero-contribution rule for non-positive targets.
    pw = jnp.where(t > 0.0, t * (jnp.log(t) - log_p), 0.0)

    # Only mask padded rows of the last block, and only generate the masking
    # code at all when the batch does not divide the tile.
    if n_rows % tile_rows != 0:
        i = pl.program_id(0)
        row_ids = (jax.lax.broadcasted_iota(jnp.int32, (pw.shape[0], 1), 0)
                   + i * tile_rows)
        pw = jnp.where(row_ids < n_rows, pw, 0.0)

    # Per-block partial sum over rows only (VPU adds); the cross-lane reduce
    # and the 1/(N*D) scale happen once, outside the kernel.
    o_ref[...] = jnp.sum(pw, axis=0)[None, None, :]


def kl_divergence(x, y, *, tile_rows=None):
    """Pallas equivalent of KLDivergence.forward(x, y) -> scalar float32."""
    assert x.shape == y.shape and x.ndim == 2, "expected 2-D (batch, classes)"
    n, d = x.shape
    kind = _device_kind()
    itemsize = max(x.dtype.itemsize, y.dtype.itemsize)

    if tile_rows is None:
        tile_rows = _pick_tile_rows(n, d, itemsize, _gen_vmem_budget_bytes(kind))
    tile_rows = min(tile_rows, n)
    num_blocks = pl.cdiv(n, tile_rows)

    bf16_eup = (x.dtype == jnp.bfloat16 and y.dtype == jnp.bfloat16
                and ("v6" in kind or "v7" in kind or "7x" in kind))

    # Explicit scoped-VMEM limit derived from the actual tile footprint.
    d_pad = max(_round_up(d, 128), 128)
    rows_pad = _round_up(tile_rows, 8)
    vmem_need = rows_pad * d_pad * (4 * itemsize + 6 * 4) + (2 << 20)
    vmem_limit = int(min(max(vmem_need, 16 << 20), 44 << 20))

    kernel = functools.partial(
        _kld_kernel, n_rows=n, tile_rows=tile_rows, bf16_eup=bf16_eup)

    partials = pl.pallas_call(
        kernel,
        out_shape=jax.ShapeDtypeStruct((num_blocks, 1, d), jnp.float32),
        grid=(num_blocks,),
        in_specs=[
            pl.BlockSpec((tile_rows, d), lambda i: (i, 0)),
            pl.BlockSpec((tile_rows, d), lambda i: (i, 0)),
        ],
        out_specs=pl.BlockSpec((1, 1, d), lambda i: (i, 0, 0)),
        compiler_params=pltpu.CompilerParams(
            # Per-block partial sums -> no carried state -> fully parallel grid
            # (lets v7x shard batch tiles across both TensorCores).
            dimension_semantics=("parallel",),
            vmem_limit_bytes=vmem_limit,
        ),
    )(x, y)

    # Tiny tree-reduced final sum + mean scaling outside the kernel.
    return jnp.sum(partials) * (1.0 / float(n * d))


def _reference(x, y):
    """Pure-JAX mirror of the PyTorch module (for checking)."""
    xf = x.astype(jnp.float32) + EPS
    t = y.astype(jnp.float32) + EPS
    log_p = jax.nn.log_softmax(xf, axis=-1)
    pw = jnp.where(t > 0.0, t * (jnp.log(t) - log_p), 0.0)
    return jnp.mean(pw)


if __name__ == "__main__":
    key = jax.random.PRNGKey(0)
    k1, k2, k3, k4 = jax.random.split(key, 4)

    # Case 1: small (batch, classes) input, single block.
    x1 = jax.random.normal(k1, (8, 32), dtype=jnp.float32)
    y1 = jax.nn.softmax(jax.random.normal(k2, (8, 32), dtype=jnp.float32), axis=-1)
    out1 = jax.block_until_ready(kl_divergence(x1, y1))
    ref1 = jax.block_until_ready(_reference(x1, y1))
    assert jnp.allclose(out1, ref1, rtol=1e-5, atol=1e-6), (out1, ref1)

    # Case 2: non-divisible batch + forced multi-block grid to exercise the
    # parallel per-block partial sums and row masking (50 rows, 16-row tiles).
    x2 = jax.random.normal(k3, (50, 32), dtype=jnp.float32)
    y2 = jax.nn.softmax(jax.random.normal(k4, (50, 32), dtype=jnp.float32), axis=-1)
    out2 = jax.block_until_ready(kl_divergence(x2, y2, tile_rows=16))
    ref2 = jax.block_until_ready(_reference(x2, y2))
    assert jnp.allclose(out2, ref2, rtol=1e-5, atol=1e-6), (out2, ref2)

    print("KERNEL_OK")
</pallas_src>

<mosaic_0001>
module attributes {stable_mosaic.version = 11 : i64} {
  func.func @_kld_kernel(%arg0: i32, %arg1: memref<8x32xf32, #tpu.memory_space<vmem>>, %arg2: memref<8x32xf32, #tpu.memory_space<vmem>>, %arg3: memref<1x1x32xf32, #tpu.memory_space<vmem>>) attributes {dimension_semantics = [#tpu.dimension_semantics<parallel>], iteration_bounds = array<i64: 1>, scalar_prefetch = 0 : i64, scratch_operands = 0 : i64, tpu.core_type = #tpu.core_type<tc>, window_params = [{transform_indices = @transform_0, window_bounds = array<i64: 8, 32>}, {transform_indices = @transform_1, window_bounds = array<i64: 8, 32>}, {transform_indices = @transform_2, window_bounds = array<i64: 1, 1, 32>}]} {
    %c0 = arith.constant 0 : index
    %c0_0 = arith.constant 0 : index
    %0 = vector.load %arg1[%c0, %c0_0] : memref<8x32xf32, #tpu.memory_space<vmem>>, vector<8x32xf32>
    %cst = arith.constant dense<0xFF800000> : vector<8xf32>
    %1 = vector.multi_reduction <maximumf>, %0, %cst [1] : vector<8x32xf32> to vector<8xf32>
    %2 = vector.shape_cast %1 : vector<8xf32> to vector<8x1xf32>
    %3 = vector.broadcast %2 : vector<8x1xf32> to vector<8x32xf32>
    %4 = arith.subf %0, %3 : vector<8x32xf32>
    %5 = math.exp %4 : vector<8x32xf32>
    %cst_1 = arith.constant dense<0.000000e+00> : vector<8xf32>
    %6 = vector.multi_reduction <add>, %5, %cst_1 [1] : vector<8x32xf32> to vector<8xf32>
    %7 = vector.shape_cast %6 : vector<8xf32> to vector<8x1xf32>
    %8 = math.log %7 : vector<8x1xf32>
    %9 = arith.addf %8, %2 : vector<8x1xf32>
    %10 = vector.broadcast %9 : vector<8x1xf32> to vector<8x32xf32>
    %11 = arith.subf %0, %10 : vector<8x32xf32>
    %c0_2 = arith.constant 0 : index
    %c0_3 = arith.constant 0 : index
    %12 = vector.load %arg2[%c0_2, %c0_3] : memref<8x32xf32, #tpu.memory_space<vmem>>, vector<8x32xf32>
    %cst_4 = arith.constant 9.99999993E-9 : f32
    %13 = vector.broadcast %cst_4 : f32 to vector<8x32xf32>
    %14 = arith.addf %12, %13 : vector<8x32xf32>
    %cst_5 = arith.constant 0.000000e+00 : f32
    %15 = vector.broadcast %cst_5 : f32 to vector<8x32xf32>
    %16 = arith.cmpf ogt, %14, %15 : vector<8x32xf32>
    %17 = math.log %14 : vector<8x32xf32>
    %18 = arith.subf %17, %11 : vector<8x32xf32>
    %19 = arith.mulf %14, %18 : vector<8x32xf32>
    %cst_6 = arith.constant 0.000000e+00 : f32
    %20 = vector.broadcast %cst_6 : f32 to vector<8x32xf32>
    %21 = arith.select %16, %19, %20 : vector<8x32xi1>, vector<8x32xf32>
    %cst_7 = arith.constant dense<0.000000e+00> : vector<32xf32>
    %22 = vector.multi_reduction <add>, %21, %cst_7 [0] : vector<8x32xf32> to vector<32xf32>
    %23 = vector.shape_cast %22 : vector<32xf32> to vector<1x1x32xf32>
    %c0_8 = arith.constant 0 : index
    %c0_9 = arith.constant 0 : index
    %c0_10 = arith.constant 0 : index
    %24 = vector.load %arg3[%c0_8, %c0_9, %c0_10] : memref<1x1x32xf32, #tpu.memory_space<vmem>>, vector<1x1x32xf32>
    tpu.vector_store %arg3[%c0_8, %c0_9, %c0_10], %23 {strides = array<i32>} : memref<1x1x32xf32, #tpu.memory_space<vmem>>, vector<1x1x32xf32>,
    return
  }
  func.func @transform_0(%arg0: i32) -> (i32, i32) {
    %c0_i32 = arith.constant 0 : i32
    %c0_i32_0 = arith.constant 0 : i32
    return %arg0, %c0_i32 : i32, i32
  }
  func.func @transform_1(%arg0: i32) -> (i32, i32) {
    %c0_i32 = arith.constant 0 : i32
    %c0_i32_0 = arith.constant 0 : i32
    return %arg0, %c0_i32 : i32, i32
  }
  func.func @transform_2(%arg0: i32) -> (i32, i32, i32) {
    %c0_i32 = arith.constant 0 : i32
    %c0_i32_0 = arith.constant 0 : i32
    %c0_i32_1 = arith.constant 0 : i32
    return %arg0, %c0_i32, %c0_i32_0 : i32, i32, i32
  }
}

</mosaic_0001>

<bundles_post_ra>
// kernel: tpu_custom_call.1
= control target key start
LH: loop header
LB: loop body
LE: loop exit
PB: predicated region body
PF: predicated region fallthrough
CT: control target
= control target key end

     0   :  { %7 = vsyncpa [#allocation3], 0  ;;  %s189_s0 = inlined_call_operand.hbm [shape: f32[8,32], index: 0, kind: input, shape index: {}]   ;;  %s190_s1 = inlined_call_operand.hbm [shape: f32[8,32], index: 1, kind: input, shape index: {}]   ;;  %s191_s2 = inlined_call_operand.hbm [shape: f32[1,1,32], index: 2, kind: output, shape index: {}]  }
   0x1   :  { %8 = vsyncpa [#allocation6], 0 }
   0x2   :  { %9 = vsyncpa [#allocation4], 0  ;;  %s159_s9 = smov [#allocation2]   ;;  %s160_s11 = smov [#allocation5]  }
   0x3   :  { %s16_s10 = sshll.u32 %s159_s9, 4  ;;  %s26_s12 = sshll.u32 %s160_s11, 4  ;;  %s17_s10 = int_to_ptr.vmem [resolvable:$true] %s16_s10  ;;  %s27_s12 = int_to_ptr.vmem [resolvable:$true] %s26_s12 }
   0x4   :  { %s101_s13 = scalar_lea.vmem %s17_s10, 128  ;;  %p106_p1 = scmp.lt.s32.totalorder %s17_s10, %s17_s10 }
   0x5   :  { %p102_p0 = scmp.ne.s32.totalorder %s17_s10, %s101_s13  ;;  %p107_p2 = scmp.lt.s32.totalorder %s101_s13, %s101_s13 }
   0x7   :  { %p108_p3 = por %p107_p2, %p106_p1 }
   0x9   :  { %p109_p4 = pnand %p108_p3, %p102_p0 }
   0xb   :  { %112 = shalt.err (!%p109_p4)
}
   0xc   :  { %19 = dma.hbm_to_vmem [thread:$0]  %s189_s0, 128, %s17_s10, [#allocation3]  }
   0xd   :  { %s121_s16 = scalar_lea.vmem %s27_s12, 128  ;;  %p126_p6 = scmp.lt.s32.totalorder %s27_s12, %s27_s12 }
   0xe   :  { %p122_p5 = scmp.ne.s32.totalorder %s27_s12, %s121_s16  ;;  %p127_p7 = scmp.lt.s32.totalorder %s121_s16, %s121_s16 }
  0x10   :  { %p128_p8 = por %p127_p7, %p126_p6 }
  0x12   :  { %p129_p9 = pnand %p128_p8, %p122_p5 }
  0x14   :  { %132 = shalt.err (!%p129_p9)
}
  0x15   :  { %29 = dma.hbm_to_vmem [thread:$0]  %s190_s1, 128, %s27_s12, [#allocation6]  }
  0x16   :  { %153 = dma.done.wait [#allocation3], 128  }
  0x17   :  { %154 = vsyncadd [#allocation3], 4294967168 }
  0x18   :  { %155 = dma.done.wait [#allocation6], 128  }
  0x19   :  { %156 = vsyncadd [#allocation6], 4294967168  ;;  %vm37_vm0 = vcmask 261120   ;;  %v36_v0 = vld [vmem:[#allocation2] sm:$0xff]  ;;  %v51_v7 = vld [vmem:[#allocation5] sm:$0xff]  ;;  %s161_s0 = smov [#allocation7]  }
  0x1a   :  { %v38_v1 = vsel %vm37_vm0, %v36_v0, -inf  ;;  %v52_v8 = vadd.f32 1e-08, %v51_v7  ;;  %s74_s1 = sshll.u32 %s161_s0, 4  ;;  %vm66_vm2 = vcmask 253952   ;;  %s75_s1 = int_to_ptr.vmem [resolvable:$true] %s74_s1 }
  0x1b   :  { %39 = vmax.xlane.f32.xlu0 %v38_v1  ;;  %s133_s19 = scalar_lea.vmem %s75_s1, 16  ;;  %s137_s20 = scalar_lea.vmem %s75_s1, 32 }
  0x1c   :  { %vm53_vm1 = vcmp.gt.f32.partialorder %v52_v8, 0.0  ;;  %p134_p10 = scmp.ne.s32.totalorder %s75_s1, %s133_s19  ;;  %p138_p11 = scmp.lt.s32.totalorder %s75_s1, %s75_s1 }
  0x1d   :  { %p139_p12 = scmp.lt.s32.totalorder %s137_s20, %s133_s19 }
  0x1f   :  { %p140_p13 = por %p139_p12, %p138_p11 }
  0x21   :  { %p141_p0 = pnand %p140_p13, %p134_p10 }
  0xa4   :  { %v40_v2 = vpop.xlane.xlu0 %39 }
  0xa5   :  { %v41_v3 = vsub.f32 %v36_v0, %v40_v2 }
  0xa7   :  { %v42_v4 = vmul.f32 1.442695, %v41_v3 }
  0xa9   :  { %87 = vpow2.f32 %v42_v4 }
  0xaa   :  { %89 = vlog2.f32 %v52_v8 }
  0xb6   :  { %v88_v5 = vpop.eup %87 }
  0xb7   :  { %v44_v6 = vsel %vm37_vm0, %v88_v5, 0.0  ;;  %v90_v10 = vpop.eup %89 }
  0xb8   :  { %45 = vadd.xlane.f32.xlu0 %v44_v6  ;;  %v55_v13 = vmul.f32 0.6931472, %v90_v10 }
 0x141   :  { %v46_v9 = vpop.xlane.xlu0 %45 }
 0x142   :  { %91 = vlog2.f32 %v46_v9 }
 0x14f   :  { %v92_v11 = vpop.eup %91 }
 0x150   :  { %v48_v12 = vmul.f32 0.6931472, %v92_v11 }
 0x152   :  { %v49_v14 = vadd.f32 %v48_v12, %v40_v2 }
 0x154   :  { %v50_v15 = vsub.f32 %v36_v0, %v49_v14 }
 0x156   :  { %v56_v16 = vsub.f32 %v55_v13, %v50_v15 }
 0x158   :  { %v57_v17 = vmul.f32 %v56_v16, %v52_v8 }
 0x15a   :  { %v58_v18 = vsel %vm53_vm1, %v57_v17, 0.0 }
 0x15b   :  { %v59_v19 = vsel %vm37_vm0, %v58_v18, 0.0 }
 0x15c   :  { %v60_v20 = vrot.slane %v59_v19, 4 }
 0x15e   :  { %v61_v21 = vadd.f32 %v60_v20, %v59_v19 }
 0x160   :  { %v62_v22 = vrot.slane %v61_v21, 2 }
 0x162   :  { %v63_v23 = vadd.f32 %v62_v22, %v61_v21 }
 0x164   :  { %v64_v24 = vrot.slane %v63_v23, 1 }
 0x166   :  { %v65_v25 = vadd.f32 %v64_v24, %v63_v23 }
 0x168   :  { %67 = vst.msk [vmem:[#allocation7] sm:$0x1] %vm66_vm2, %v65_v25 }
 0x169   :  { %144 = shalt.err (!%p141_p0)
}
 0x16a   :  { %77 = dma.vmem_to_hbm [thread:$0]  %s75_s1, 16, %s191_s2, [#allocation4]  }
 0x16b   :  { %157 = dma.done.wait [#allocation4], 16  }
 0x16c   :  { %158 = vsyncadd [#allocation4], 4294967280 }
 0x16d   :  { %81 = vsyncpa [#allocation3], 1 }
 0x16e   :  { %82 = vsyncpa [#allocation6], 1 }
 0x16f   :  { %83 = vsyncpa [#allocation4], 1 }

</bundles_post_ra>
